<compile_context>
chip_gen: v6e
topology: v6e:2x2x1
jax: 0.10.0
libtpu: 0.0.40
codegen_flags: <defaults>
</compile_context>

<pallas_src>
import math
import functools
import numpy as np
import jax
import jax.numpy as jnp
from jax.experimental import pallas as pl
from jax.experimental.pallas import tpu as pltpu


def _bilinear_matrix(n_in, n_out):
    """1-D bilinear interpolation matrix (n_out, n_in), align_corners=True."""
    if n_out == 1:
        src = np.zeros((1,), np.float64)
    else:
        src = np.arange(n_out, dtype=np.float64) * (n_in - 1) / (n_out - 1)
    lo = np.clip(np.floor(src).astype(np.int64), 0, n_in - 1)
    hi = np.minimum(lo + 1, n_in - 1)
    frac = src - lo
    A = np.zeros((n_out, n_in), np.float64)
    rows = np.arange(n_out)
    np.add.at(A, (rows, lo), 1.0 - frac)
    np.add.at(A, (rows, hi), frac)
    return A.astype(np.float32)


def _reflect_index(n, pad):
    """torch 'reflect' padding index map (requires pad < n), length n + 2*pad."""
    i = np.arange(-pad, n + pad)
    i = np.abs(i)
    i = np.where(i >= n, 2 * (n - 1) - i, i)
    return i


def _pick_cout_groups(Cout, Hout, max_lanes=2048):
    """Smallest number of Cout groups whose lane width fits max_lanes and is 128-aligned (or 1 group)."""
    for g in range(1, Cout + 1):
        if Cout % g:
            continue
        lanes = (Cout // g) * Hout
        if lanes <= max_lanes and (g == 1 or lanes % 128 == 0):
            return g
    return 1


def upconv_forward(x, w, b, gamma, beta, *, kernel_size, scale, eps=1e-5):
    N, Cin, Hin, Win = x.shape
    Cout = w.shape[0]
    K = kernel_size
    pad = (K - 1) // 2
    Hout = int(math.floor(Hin * float(scale)))   # torch floor semantics
    Wout = int(math.floor(Win * float(scale)))
    assert pad < Hout and pad < Wout, "reflect padding requires pad < upsampled spatial dims"
    assert (Win % 8 == 0) or N == 1, "Win must be a sublane multiple when batched on the grid"
    assert (Wout % 8 == 0) or N == 1, "Wout must be a sublane multiple when batched on the grid"
    # TODO(synk): pad Win/Wout rows up to a multiple of 8 for shapes that violate the (8,128) block rule.

    CH_in = Cin * Hin
    CH_out = Cout * Hout
    HW = Hout * Wout

    n_groups = _pick_cout_groups(Cout, Hout)
    Cg = Cout // n_groups
    CHg = Cg * Hout

    # ---------- shape-only host constants (independent of runtime tensor values) ----------
    Ah = _bilinear_matrix(Hin, Hout)                              # (Hout, Hin)
    Aw = _bilinear_matrix(Win, Wout)                              # (Wout, Win)
    Ahp = Ah[_reflect_index(Hout, pad)]                           # (Hout+2p, Hin)
    Awp = Aw[_reflect_index(Wout, pad)]                           # (Wout+2p, Win)
    A_w = np.concatenate([Awp[kw:kw + Wout, :] for kw in range(K)], axis=0)   # (K*Wout, Win)
    Ahp_taps = np.stack([Ahp[kh:kh + Hout, :] for kh in range(K)], axis=0)    # (K, Hout, Hin)
    # lane-dense channel indicator: RcT[c, c'*Hout + h] = delta(c, c')
    RcT = np.kron(np.eye(Cg, dtype=np.float32), np.ones((1, Hout), np.float32))   # (Cg, CHg)

    # ---------- on-device (traceable) parameter preprocessing ----------
    # BkT[kw, ci*Hin+hi, co*Hout+ho] = sum_kh w[co,ci,kh,kw] * Ahp[ho+kh, hi]
    # TODO(synk): the dense BkT is O(K*Cin*Hin*Cout*Hout); for very large C/H restructure into
    # separable H-interp + per-tap (Cout,Cin) channel-mix matmuls instead of one fused operand.
    w_f = jnp.asarray(w, jnp.float32)
    BkT = jnp.einsum('oipq,phl->qiloh', w_f, jnp.asarray(Ahp_taps, jnp.float32))
    BkT = BkT.reshape(K, CH_in, CH_out).astype(jnp.bfloat16)      # (K, Cin*Hin, Cout*Hout)

    # per-channel params as one lane-dense row block: rows = [conv bias, gamma, beta], repeated per Hout
    params = jnp.stack([jnp.repeat(jnp.asarray(b, jnp.float32), Hout),
                        jnp.repeat(jnp.asarray(gamma, jnp.float32), Hout),
                        jnp.repeat(jnp.asarray(beta, jnp.float32), Hout)], axis=0)  # (3, CH_out)

    # input in (N*Win, Cin*Hin): rows=(n,wi), lanes=(ci,hi); bf16 feed for the MXU
    xT = jnp.transpose(jnp.asarray(x, jnp.float32), (0, 3, 1, 2)).reshape(N * Win, CH_in)
    xT = xT.astype(jnp.bfloat16)

    inv_hw = np.float32(1.0 / HW)
    eps_f = np.float32(eps)

    def kernel(x_ref, a_ref, bkt_ref, rct_ref, prm_ref, o_ref):
        # x_ref  : (Win, Cin*Hin)        bf16  one batch element, rows=wi, lanes=(ci,hi)
        # a_ref  : (K*Wout, Win)         bf16  W-interp + reflect pad, all K column taps stacked
        # bkt_ref: (K, Cin*Hin, Cg*Hout) bf16  H-interp + reflect pad + channel mix, per tap
        # rct_ref: (Cg, Cg*Hout)         f32   lane-dense channel indicator
        # prm_ref: (3, Cg*Hout)          f32   rows = [conv bias, gamma, beta]
        # o_ref  : (Wout, Cg*Hout)       f32

        # 1) W-direction bilinear interp + reflect pad + all K column taps: one bf16 matmul
        u_all = jnp.dot(a_ref[...], x_ref[...],
                        preferred_element_type=jnp.float32)               # (K*Wout, Cin*Hin)
        u_all = u_all.astype(jnp.bfloat16)
        # TODO(synk): u_all is lane-width Cin*Hin (<128 at small C/H) and is recomputed per Cout group;
        # at large sizes reassociate so the lane-dense CH_out side is produced first.

        # 2) H-direction interp + reflect pad + row taps + channel mixing: K bf16 matmuls, f32 accumulate
        acc = jnp.dot(u_all[0:Wout, :], bkt_ref[0], preferred_element_type=jnp.float32)
        for kw in range(1, K):
            acc = acc + jnp.dot(u_all[kw * Wout:(kw + 1) * Wout, :], bkt_ref[kw],
                                preferred_element_type=jnp.float32)       # (Wout, Cg*Hout)

        y = acc + prm_ref[0:1, :]                                         # conv bias (f32)

        # 3) InstanceNorm2d: this block owns every spatial position of its channels, so per-channel
        #    stats are exact.  W reduction on sublanes, H reduction via one tiny matmul against RcT.
        s = jnp.concatenate([jnp.sum(y, axis=0, keepdims=True),
                             jnp.sum(y * y, axis=0, keepdims=True)], axis=0)       # (2, CHg) f32
        t = jax.lax.dot_general(s, rct_ref[...], (((1,), (1,)), ((), ())),
                                preferred_element_type=jnp.float32)                # (2, Cg)
        mean = t[0:1, :] * inv_hw
        var = jnp.maximum(t[1:2, :] * inv_hw - mean * mean, 0.0)   # clamp: one-pass var can dip < 0
        inv = jax.lax.rsqrt(var + eps_f)                                           # (1, Cg)

        # broadcast per-channel (mean, inv) back over the Hout lanes with one tiny matmul,
        # then fuse the affine into the per-channel scale/shift so the big epilogue is one FMA.
        mi = jnp.concatenate([mean, inv], axis=0)                                  # (2, Cg)
        mi_full = jnp.dot(mi, rct_ref[...], preferred_element_type=jnp.float32)    # (2, CHg)
        a_row = mi_full[1:2, :] * prm_ref[1:2, :]                  # inv * gamma
        b_row = prm_ref[2:3, :] - mi_full[0:1, :] * a_row          # beta - mean * inv * gamma
        z = y * a_row + b_row
        # ELU(alpha=1): exp only on the non-positive side
        o_ref[...] = jnp.where(z > 0, z, jnp.exp(jnp.minimum(z, 0.0)) - 1.0).astype(o_ref.dtype)

    # advisory cost estimate (totals over the whole grid)
    flops = N * n_groups * 2 * (
        (K * Wout) * Win * CH_in       # W-interp matmul
        + K * Wout * CH_in * CHg       # K tap matmuls
        + 2 * CHg * Cg                 # stats reduce matmul
        + 2 * Cg * CHg                 # stats broadcast matmul
        + 4 * Wout * CHg)              # elementwise epilogue (rough)
    transcendentals = N * Wout * CH_out + N * Cout
    bytes_accessed = (2 * (N * Win * CH_in + n_groups * K * Wout * Win + K * CH_in * CH_out)
                      + 4 * (Cg * CHg + 3 * CH_out + N * Wout * CH_out))

    # generation-aware-ish VMEM limit: generous double-buffering headroom, capped at 48 MiB (v7x-safe)
    block_bytes = (Win * CH_in * 2 + K * Wout * Win * 2 + K * CH_in * CHg * 2
                   + Cg * CHg * 4 + 3 * CHg * 4 + Wout * CHg * 4)
    vmem_limit = int(min(max(6 * block_bytes + (4 << 20), 16 << 20), 48 << 20))

    out2 = pl.pallas_call(
        kernel,
        out_shape=jax.ShapeDtypeStruct((N * Wout, CH_out), jnp.float32),
        grid=(n_groups, N),            # Cout groups outer so the BkT block stays resident across batch
        in_specs=[
            pl.BlockSpec((Win, CH_in), lambda g, n: (n, 0)),          # x, per batch element
            pl.BlockSpec((K * Wout, Win), lambda g, n: (0, 0)),       # A (constant, VMEM-resident)
            pl.BlockSpec((K, CH_in, CHg), lambda g, n: (0, 0, g)),    # BkT, per Cout group
            pl.BlockSpec((Cg, CHg), lambda g, n: (0, 0)),             # RcT (constant)
            pl.BlockSpec((3, CHg), lambda g, n: (0, g)),              # [bias; gamma; beta]
        ],
        out_specs=pl.BlockSpec((Wout, CHg), lambda g, n: (n, g)),
        cost_estimate=pl.CostEstimate(flops=int(flops),
                                      transcendentals=int(transcendentals),
                                      bytes_accessed=int(bytes_accessed)),
        compiler_params=pltpu.CompilerParams(
            dimension_semantics=(pltpu.PARALLEL, pltpu.PARALLEL),
            vmem_limit_bytes=vmem_limit),
    )(xT, jnp.asarray(A_w, jnp.bfloat16), BkT, jnp.asarray(RcT, jnp.float32), params)

    # layout plumbing back to NCHW: rows=(n,wo), lanes=(co,ho) -> (N, Cout, Hout, Wout)
    return out2.reshape(N, Wout, Cout, Hout).transpose(0, 2, 3, 1)


def upconv_reference(x, w, b, gamma, beta, *, kernel_size, scale, eps=1e-5):
    """Pure-JAX reference mirroring the PyTorch module semantics."""
    N, Cin, Hin, Win = x.shape
    K = kernel_size
    pad = (K - 1) // 2
    Hout = int(math.floor(Hin * float(scale)))
    Wout = int(math.floor(Win * float(scale)))
    Ah = jnp.asarray(_bilinear_matrix(Hin, Hout))
    Aw = jnp.asarray(_bilinear_matrix(Win, Wout))
    up = jnp.einsum('ph,nchw->ncpw', Ah, x)
    up = jnp.einsum('qw,ncpw->ncpq', Aw, up)
    upp = jnp.pad(up, ((0, 0), (0, 0), (pad, pad), (pad, pad)), mode='reflect')
    y = jax.lax.conv_general_dilated(upp, w, window_strides=(1, 1), padding='VALID',
                                     dimension_numbers=('NCHW', 'OIHW', 'NCHW'))
    y = y + b.reshape(1, -1, 1, 1)
    mu = jnp.mean(y, axis=(2, 3), keepdims=True)
    var = jnp.mean((y - mu) ** 2, axis=(2, 3), keepdims=True)
    z = (y - mu) / jnp.sqrt(var + eps)
    z = z * gamma.reshape(1, -1, 1, 1) + beta.reshape(1, -1, 1, 1)
    return jnp.where(z > 0, z, jnp.exp(jnp.minimum(z, 0.0)) - 1.0)


if __name__ == "__main__":
    # upconv(num_in_layers=4, num_out_layers=8, kernel_size=3, scale=2)
    N, Cin, Hin, Win = 2, 4, 16, 16
    Cout, K, scale = 8, 3, 2

    key = jax.random.PRNGKey(0)
    k1, k2, k3, k4, k5 = jax.random.split(key, 5)
    x = jax.random.normal(k1, (N, Cin, Hin, Win), jnp.float32)
    w = 0.05 * jax.random.normal(k2, (Cout, Cin, K, K), jnp.float32)   # Conv2d weight
    b = 0.05 * jax.random.normal(k3, (Cout,), jnp.float32)             # Conv2d bias
    gamma = 1.0 + 0.1 * jax.random.normal(k4, (Cout,), jnp.float32)    # InstanceNorm2d weight
    beta = 0.1 * jax.random.normal(k5, (Cout,), jnp.float32)           # InstanceNorm2d bias

    # fully traceable: parameter preprocessing and the pallas_call live under one jit
    fwd = jax.jit(functools.partial(upconv_forward, kernel_size=K, scale=scale))
    out = jax.block_until_ready(fwd(x, w, b, gamma, beta))
    assert out.shape == (N, Cout, Hin * scale, Win * scale)

    ref = jax.block_until_ready(
        upconv_reference(x, w, b, gamma, beta, kernel_size=K, scale=scale))
    if not np.allclose(np.asarray(out), np.asarray(ref), rtol=2e-2, atol=2e-2):
        err = float(np.max(np.abs(np.asarray(out) - np.asarray(ref))))
        raise AssertionError(
            f"Pallas upconv output does not match the JAX reference (max abs err {err:.3e})")

    print("KERNEL_OK")
</pallas_src>

<mosaic_0001>
module attributes {stable_mosaic.version = 11 : i64} {
  func.func @kernel(%arg0: i32, %arg1: i32, %arg2: memref<16x64xbf16, #tpu.memory_space<vmem>>, %arg3: memref<96x16xbf16, #tpu.memory_space<vmem>>, %arg4: memref<3x64x256xbf16, #tpu.memory_space<vmem>>, %arg5: memref<8x256xf32, #tpu.memory_space<vmem>>, %arg6: memref<3x256xf32, #tpu.memory_space<vmem>>, %arg7: memref<32x256xf32, #tpu.memory_space<vmem>>) attributes {dimension_semantics = [#tpu.dimension_semantics<parallel>, #tpu.dimension_semantics<parallel>], iteration_bounds = array<i64: 1, 2>, scalar_prefetch = 0 : i64, scratch_operands = 0 : i64, tpu.core_type = #tpu.core_type<tc>, window_params = [{transform_indices = @transform_0, window_bounds = array<i64: 16, 64>}, {pipeline_mode = #tpu.pipeline_mode<synchronous>, transform_indices = @transform_1, window_bounds = array<i64: 96, 16>}, {transform_indices = @transform_2, window_bounds = array<i64: 3, 64, 256>}, {pipeline_mode = #tpu.pipeline_mode<synchronous>, transform_indices = @transform_3, window_bounds = array<i64: 8, 256>}, {transform_indices = @transform_4, window_bounds = array<i64: 3, 256>}, {transform_indices = @transform_5, window_bounds = array<i64: 32, 256>}]} {
    %c0 = arith.constant 0 : index
    %c0_0 = arith.constant 0 : index
    %0 = vector.load %arg3[%c0, %c0_0] : memref<96x16xbf16, #tpu.memory_space<vmem>>, vector<96x16xbf16>
    %c0_1 = arith.constant 0 : index
    %c0_2 = arith.constant 0 : index
    %1 = vector.load %arg2[%c0_1, %c0_2] : memref<16x64xbf16, #tpu.memory_space<vmem>>, vector<16x64xbf16>
    %cst = arith.constant dense<0.000000e+00> : vector<96x64xf32>
    %2 = tpu.matmul %0, %1, %cst {dimension_numbers = #tpu.dot_dimension_numbers<[1], [0], [0], [1], [0, 0, 1, 1], [], []>} : vector<96x16xbf16>, vector<16x64xbf16>, vector<96x64xf32> -> vector<96x64xf32>
    %3 = arith.truncf %2 : vector<96x64xf32> to vector<96x64xbf16>
    %4 = vector.extract_strided_slice %3 {offsets = [0, 0], sizes = [32, 64], strides = [1, 1]} : vector<96x64xbf16> to vector<32x64xbf16>
    %c0_3 = arith.constant 0 : index
    %c0_4 = arith.constant 0 : index
    %c0_5 = arith.constant 0 : index
    %5 = vector.load %arg4[%c0_3, %c0_4, %c0_5] : memref<3x64x256xbf16, #tpu.memory_space<vmem>>, vector<1x64x256xbf16>
    %6 = vector.shape_cast %5 : vector<1x64x256xbf16> to vector<64x256xbf16>
    %cst_6 = arith.constant dense<0.000000e+00> : vector<32x256xf32>
    %7 = tpu.matmul %4, %6, %cst_6 {dimension_numbers = #tpu.dot_dimension_numbers<[1], [0], [0], [1], [0, 0, 1, 1], [], []>} : vector<32x64xbf16>, vector<64x256xbf16>, vector<32x256xf32> -> vector<32x256xf32>
    %8 = vector.extract_strided_slice %3 {offsets = [32, 0], sizes = [32, 64], strides = [1, 1]} : vector<96x64xbf16> to vector<32x64xbf16>
    %c1 = arith.constant 1 : index
    %c0_7 = arith.constant 0 : index
    %c0_8 = arith.constant 0 : index
    %9 = vector.load %arg4[%c1, %c0_7, %c0_8] : memref<3x64x256xbf16, #tpu.memory_space<vmem>>, vector<1x64x256xbf16>
    %10 = vector.shape_cast %9 : vector<1x64x256xbf16> to vector<64x256xbf16>
    %cst_9 = arith.constant dense<0.000000e+00> : vector<32x256xf32>
    %11 = tpu.matmul %8, %10, %cst_9 {dimension_numbers = #tpu.dot_dimension_numbers<[1], [0], [0], [1], [0, 0, 1, 1], [], []>} : vector<32x64xbf16>, vector<64x256xbf16>, vector<32x256xf32> -> vector<32x256xf32>
    %12 = arith.addf %7, %11 : vector<32x256xf32>
    %13 = vector.extract_strided_slice %3 {offsets = [64, 0], sizes = [32, 64], strides = [1, 1]} : vector<96x64xbf16> to vector<32x64xbf16>
    %c2 = arith.constant 2 : index
    %c0_10 = arith.constant 0 : index
    %c0_11 = arith.constant 0 : index
    %14 = vector.load %arg4[%c2, %c0_10, %c0_11] : memref<3x64x256xbf16, #tpu.memory_space<vmem>>, vector<1x64x256xbf16>
    %15 = vector.shape_cast %14 : vector<1x64x256xbf16> to vector<64x256xbf16>
    %cst_12 = arith.constant dense<0.000000e+00> : vector<32x256xf32>
    %16 = tpu.matmul %13, %15, %cst_12 {dimension_numbers = #tpu.dot_dimension_numbers<[1], [0], [0], [1], [0, 0, 1, 1], [], []>} : vector<32x64xbf16>, vector<64x256xbf16>, vector<32x256xf32> -> vector<32x256xf32>
    %17 = arith.addf %12, %16 : vector<32x256xf32>
    %c0_13 = arith.constant 0 : index
    %c0_14 = arith.constant 0 : index
    %18 = vector.load %arg6[%c0_13, %c0_14] : memref<3x256xf32, #tpu.memory_space<vmem>>, vector<1x256xf32>
    %19 = vector.broadcast %18 : vector<1x256xf32> to vector<32x256xf32>
    %20 = arith.addf %17, %19 : vector<32x256xf32>
    %cst_15 = arith.constant dense<0.000000e+00> : vector<256xf32>
    %21 = vector.multi_reduction <add>, %20, %cst_15 [0] : vector<32x256xf32> to vector<256xf32>
    %22 = vector.shape_cast %21 : vector<256xf32> to vector<1x256xf32>
    %23 = arith.mulf %20, %20 : vector<32x256xf32>
    %cst_16 = arith.constant dense<0.000000e+00> : vector<256xf32>
    %24 = vector.multi_reduction <add>, %23, %cst_16 [0] : vector<32x256xf32> to vector<256xf32>
    %25 = vector.shape_cast %24 : vector<256xf32> to vector<1x256xf32>
    %26 = tpu.concatenate %22, %25 in 0 : vector<1x256xf32>, vector<1x256xf32> -> vector<2x256xf32>
    %c0_17 = arith.constant 0 : index
    %c0_18 = arith.constant 0 : index
    %27 = vector.load %arg5[%c0_17, %c0_18] : memref<8x256xf32, #tpu.memory_space<vmem>>, vector<8x256xf32>
    %cst_19 = arith.constant dense<0.000000e+00> : vector<2x8xf32>
    %28 = tpu.matmul %26, %27, %cst_19 {dimension_numbers = #tpu.dot_dimension_numbers<[1], [1], [0], [0], [0, 0, 1, 0], [], []>} : vector<2x256xf32>, vector<8x256xf32>, vector<2x8xf32> -> vector<2x8xf32>
    %29 = vector.extract_strided_slice %28 {offsets = [0, 0], sizes = [1, 8], strides = [1, 1]} : vector<2x8xf32> to vector<1x8xf32>
    %cst_20 = arith.constant 9.765625E-4 : f32
    %30 = vector.broadcast %cst_20 : f32 to vector<1x8xf32>
    %31 = arith.mulf %29, %30 : vector<1x8xf32>
    %32 = vector.extract_strided_slice %28 {offsets = [1, 0], sizes = [1, 8], strides = [1, 1]} : vector<2x8xf32> to vector<1x8xf32>
    %cst_21 = arith.constant 9.765625E-4 : f32
    %33 = vector.broadcast %cst_21 : f32 to vector<1x8xf32>
    %34 = arith.mulf %32, %33 : vector<1x8xf32>
    %35 = arith.mulf %31, %31 : vector<1x8xf32>
    %36 = arith.subf %34, %35 : vector<1x8xf32>
    %cst_22 = arith.constant 0.000000e+00 : f32
    %37 = vector.broadcast %cst_22 : f32 to vector<1x8xf32>
    %38 = arith.maximumf %36, %37 : vector<1x8xf32>
    %cst_23 = arith.constant 9.99999974E-6 : f32
    %39 = vector.broadcast %cst_23 : f32 to vector<1x8xf32>
    %40 = arith.addf %38, %39 : vector<1x8xf32>
    %41 = math.rsqrt %40 : vector<1x8xf32>
    %42 = tpu.concatenate %31, %41 in 0 : vector<1x8xf32>, vector<1x8xf32> -> vector<2x8xf32>
    %c0_24 = arith.constant 0 : index
    %c0_25 = arith.constant 0 : index
    %43 = vector.load %arg5[%c0_24, %c0_25] : memref<8x256xf32, #tpu.memory_space<vmem>>, vector<8x256xf32>
    %cst_26 = arith.constant dense<0.000000e+00> : vector<2x256xf32>
    %44 = tpu.matmul %42, %43, %cst_26 {dimension_numbers = #tpu.dot_dimension_numbers<[1], [0], [0], [1], [0, 0, 1, 1], [], []>} : vector<2x8xf32>, vector<8x256xf32>, vector<2x256xf32> -> vector<2x256xf32>
    %45 = vector.extract_strided_slice %44 {offsets = [1, 0], sizes = [1, 256], strides = [1, 1]} : vector<2x256xf32> to vector<1x256xf32>
    %c1_27 = arith.constant 1 : index
    %c0_28 = arith.constant 0 : index
    %46 = vector.load %arg6[%c1_27, %c0_28] : memref<3x256xf32, #tpu.memory_space<vmem>>, vector<1x256xf32>
    %47 = arith.mulf %45, %46 : vector<1x256xf32>
    %c2_29 = arith.constant 2 : index
    %c0_30 = arith.constant 0 : index
    %48 = vector.load %arg6[%c2_29, %c0_30] : memref<3x256xf32, #tpu.memory_space<vmem>>, vector<1x256xf32>
    %49 = vector.extract_strided_slice %44 {offsets = [0, 0], sizes = [1, 256], strides = [1, 1]} : vector<2x256xf32> to vector<1x256xf32>
    %50 = arith.mulf %49, %47 : vector<1x256xf32>
    %51 = arith.subf %48, %50 : vector<1x256xf32>
    %52 = vector.broadcast %47 : vector<1x256xf32> to vector<32x256xf32>
    %53 = arith.mulf %20, %52 : vector<32x256xf32>
    %54 = vector.broadcast %51 : vector<1x256xf32> to vector<32x256xf32>
    %55 = arith.addf %53, %54 : vector<32x256xf32>
    %cst_31 = arith.constant 0.000000e+00 : f32
    %56 = vector.broadcast %cst_31 : f32 to vector<32x256xf32>
    %57 = arith.cmpf ogt, %55, %56 : vector<32x256xf32>
    %cst_32 = arith.constant 0.000000e+00 : f32
    %58 = vector.broadcast %cst_32 : f32 to vector<32x256xf32>
    %59 = arith.minimumf %55, %58 : vector<32x256xf32>
    %60 = math.exp %59 : vector<32x256xf32>
    %cst_33 = arith.constant 1.000000e+00 : f32
    %61 = vector.broadcast %cst_33 : f32 to vector<32x256xf32>
    %62 = arith.subf %60, %61 : vector<32x256xf32>
    %63 = arith.select %57, %55, %62 : vector<32x256xi1>, vector<32x256xf32>
    %c0_34 = arith.constant 0 : index
    %c0_35 = arith.constant 0 : index
    %64 = vector.load %arg7[%c0_34, %c0_35] : memref<32x256xf32, #tpu.memory_space<vmem>>, vector<32x256xf32>
    tpu.vector_store %arg7[%c0_34, %c0_35], %63 {strides = array<i32>} : memref<32x256xf32, #tpu.memory_space<vmem>>, vector<32x256xf32>,
    return
  }
  func.func @transform_0(%arg0: i32, %arg1: i32) -> (i32, i32) {
    %c0_i32 = arith.constant 0 : i32
    %c0_i32_0 = arith.constant 0 : i32
    return %arg1, %c0_i32 : i32, i32
  }
  func.func @transform_1(%arg0: i32, %arg1: i32) -> (i32, i32) {
    %c0_i32 = arith.constant 0 : i32
    %c0_i32_0 = arith.constant 0 : i32
    %c0_i32_1 = arith.constant 0 : i32
    return %c0_i32, %c0_i32_0 : i32, i32
  }
  func.func @transform_2(%arg0: i32, %arg1: i32) -> (i32, i32, i32) {
    %c0_i32 = arith.constant 0 : i32
    %c0_i32_0 = arith.constant 0 : i32
    %c0_i32_1 = arith.constant 0 : i32
    return %c0_i32, %c0_i32_0, %arg0 : i32, i32, i32
  }
  func.func @transform_3(%arg0: i32, %arg1: i32) -> (i32, i32) {
    %c0_i32 = arith.constant 0 : i32
    %c0_i32_0 = arith.constant 0 : i32
    %c0_i32_1 = arith.constant 0 : i32
    return %c0_i32, %c0_i32_0 : i32, i32
  }
  func.func @transform_4(%arg0: i32, %arg1: i32) -> (i32, i32) {
    %c0_i32 = arith.constant 0 : i32
    %c0_i32_0 = arith.constant 0 : i32
    return %c0_i32, %arg0 : i32, i32
  }
  func.func @transform_5(%arg0: i32, %arg1: i32) -> (i32, i32) {
    %c0_i32 = arith.constant 0 : i32
    return %arg1, %arg0 : i32, i32
  }
}

</mosaic_0001>

<bundles_post_ra>
// kernel: upconv_forward.1
= control target key start
LH: loop header
LB: loop body
LE: loop exit
PB: predicated region body
PF: predicated region fallthrough
CT: control target
= control target key end

     0   :  { %s1510_s18 = smov 0   ;;  %s1512_s19 = smov 0   ;;  %s1761_s0 = inlined_call_operand.vmem [shape: bf16[32,64], index: 0, kind: input, shape index: {}]   ;;  %s1762_s1 = inlined_call_operand.vmem [shape: bf16[96,16], index: 1, kind: input, shape index: {}]   ;;  %s1763_s2 = inlined_call_operand.vmem [shape: bf16[3,64,256], index: 2, kind: input, shape index: {}]   ;;  %s1764_s3 = inlined_call_operand.vmem [shape: f32[8,256], index: 3, kind: input, shape index: {}]   ;;  %s1765_s4 = inlined_call_operand.vmem [shape: f32[3,256], index: 4, kind: input, shape index: {}]   ;;  %s1766_s5 = inlined_call_operand.vmem [shape: f32[64,256], index: 5, kind: output, shape index: {}]  }
   0x1   :  { %s1514_s20 = smov 0  }
   0x2 LB: > { %s24_s21 = sadd.s32 1, %s1471_s19  ;;  %p1265_p0 = scmp.ge.s32.totalorder %s1475_s20, 1  ;;  %s1475_s20 = sphi %s1514_s20, %s15_s20   ;;  %s1471_s19 = sphi %s1512_s19, %s1768_s19   ;;  %s1467_s18 = sphi %s1510_s18, %s1767_s18  }
   0x3   : > { %p25_p1 = scmp.ge.s32.totalorder %s24_s21, 2  ;;  %p224_p2 = scmp.lt.s32.totalorder %s1475_s20, 3 }
   0x5   : > { %s1770_s21 = smov (%p25_p1, %s24_s21), 0  ;;  %p225_p3 = pnand %p1265_p0, %p224_p2 }
   0x6   : > { %s1266_s22 = sshll.u32 (!%p225_p3), %s1467_s18, 1  ;;  %s1268_s9 = sshll.u32 (!%p225_p3), %s1467_s18, 2 }
   0x7   : > { %228 = sbr.rel (%p225_p3) target bundleno = 936 (0x3a8), region = 40  ;;  %p268_p4 = scmp.lt.s32.totalorder (!%p225_p3), %s1266_s22, 3 }
   0x8   : > { %p287_p5 = scmp.lt.s32.totalorder (!%p225_p3), %s1268_s9, 7 }
   0xc   : > { %v1393_v0 = vld [vmem:[%s1762_s1] sm:$0xff]   ;;  %vm348_vm0 = vcmask 130048   ;;  %s1772_s22 = smov (!%p268_p4, %s1266_s22), 3  ;;  %v1394_v2 = vld [vmem:[%s1762_s1 + $0x8] sm:$0xff]   ;;  %v1395_v3 = vld [vmem:[%s1762_s1 + $0x10] sm:$0xff]   ;;  %v1477_v20 = vmov 0   ;;  %v788_v60 = vlaneseq }
   0xd   : > { %1353 = vmatprep.mubr.msk.bf16.mxu0 %vm348_vm0, %v1393_v0  ;;  %s1267_s25 = sshll.u32 %s1772_s22, 2  ;;  %v1401_v4 = vld [vmem:[%s1763_s2 + $0x34] ss:$8 sps:$4 sm:$0xff]   ;;  %v1399_v5 = vld [vmem:[%s1763_s2 + $0x30] ss:$8 sps:$4 sm:$0xff]   ;;  %v1397_v9 = vld [vmem:[%s1762_s1 + $0x20] sm:$0xff]   ;;  %550 = vmatprep.mubr.bf16.mxu1 %v1477_v20 }
   0xe   : > { %s271_s28 = scalar_lea.vmem %s1761_s0, %s1267_s25  ;;  %v1404_v6 = vld [vmem:[%s1763_s2 + $0x24] ss:$8 sps:$4 sm:$0xff]   ;;  %v1402_v7 = vld [vmem:[%s1763_s2 + $0x20] ss:$8 sps:$4 sm:$0xff]   ;;  %v1396_v8 = vld [vmem:[%s1762_s1 + $0x18] sm:$0xff]   ;;  %vm511_vm1 = vcmask 523264  }
   0xf   : > { %v1392_v1 = vld [vmem:[%s271_s28] sm:$0xff]   ;;  %v1398_v10 = vld [vmem:[%s1762_s1 + $0x28] sm:$0xff]   ;;  %v1405_v11 = vld [vmem:[%s1763_s2 + $0x74] ss:$8 sps:$4 sm:$0xff]   ;;  %v1645_v0 = vshrl.u32 %v788_v60, 7  ;;  %vm850_vm2 = vcmask 1040384  }
  0x10   : > { %1351 = vmatprep.subr.bf16.mxu0 %v1392_v1  ;;  %v1410_v12 = vld [vmem:[%s1763_s2 + $0x14] ss:$8 sps:$4 sm:$0xff]   ;;  %v1407_v13 = vld [vmem:[%s1763_s2 + $0x70] ss:$8 sps:$4 sm:$0xff]   ;;  %526 = vmatprep.subr.bf16.mxu1 %v1405_v11  ;;  %v1411_v15 = vld [vmem:[%s1763_s2 + $0x64] ss:$8 sps:$4 sm:$0xff]  }
  0x11   : > { %1352 = vmatpush3.bf16.msra.mxu0 %v1392_v1  ;;  %v1408_v14 = vld [vmem:[%s1763_s2 + $0x10] ss:$8 sps:$4 sm:$0xff]   ;;  %527 = vmatpush1.bf16.msra.mxu1 %v1407_v13  ;;  %v1416_v16 = vld [vmem:[%s1763_s2 + $0x4] ss:$8 sps:$4 sm:$0xff]   ;;  %v1413_v17 = vld [vmem:[%s1763_s2 + $0x60] ss:$8 sps:$4 sm:$0xff]  }
  0x12   : > { %625 = vmatprep.subr.bf16.mxu0 %v1401_v4  ;;  %v1414_v18 = vld [vmem:[%s1763_s2] ss:$8 sps:$4 sm:$0xff]   ;;  %528 = vmatprep.subr.bf16.mxu1 %v1411_v15  ;;  %v1417_v19 = vld [vmem:[%s1763_s2 + $0x54] ss:$8 sps:$4 sm:$0xff]   ;;  %v1419_v21 = vld [vmem:[%s1763_s2 + $0x50] ss:$8 sps:$4 sm:$0xff]  }
  0x13   : > { %v1420_v22 = vld [vmem:[%s1763_s2 + $0x44] ss:$8 sps:$4 sm:$0xff]   ;;  %v1422_v23 = vld [vmem:[%s1763_s2 + $0x40] ss:$8 sps:$4 sm:$0xff]   ;;  %v1425_v24 = vld [vmem:[%s1763_s2 + $0xb4] ss:$8 sps:$4 sm:$0xff]  }
  0x14   : > { %1354 = vmatmul.mubr.msk.bf16.vlgmr.msra.gmra.mxu0 %vm348_vm0, %v1394_v2  ;;  %v1423_v34 = vld [vmem:[%s1763_s2 + $0xb0] ss:$8 sps:$4 sm:$0xff]   ;;  %v1428_v37 = vld [vmem:[%s1763_s2 + $0xa4] ss:$8 sps:$4 sm:$0xff]   ;;  %v1426_v39 = vld [vmem:[%s1763_s2 + $0xa0] ss:$8 sps:$4 sm:$0xff]  }
  0x15   : > { %1357 = vmatprep.mubr.msk.bf16.mxu0 %vm348_vm0, %v1395_v3  ;;  %626 = vmatpush1.bf16.msra.mxu0 %v1399_v5  ;;  %v1431_v40 = vld [vmem:[%s1763_s2 + $0x94] ss:$8 sps:$4 sm:$0xff]   ;;  %v1429_v42 = vld [vmem:[%s1763_s2 + $0x90] ss:$8 sps:$4 sm:$0xff]   ;;  %v1434_v44 = vld [vmem:[%s1763_s2 + $0x84] ss:$8 sps:$4 sm:$0xff]  }
  0x16   : > { %627 = vmatprep.subr.bf16.mxu0 %v1404_v6  ;;  %529 = vmatpush1.bf16.msra.mxu1 %v1413_v17  ;;  %v1432_v46 = vld [vmem:[%s1763_s2 + $0x80] ss:$8 sps:$4 sm:$0xff]   ;;  %v1648_v4 = vsub.s32 0, %v1645_v0  ;;  %vm935_vm3 = vcmask 64512   ;;  %s1774_s9 = smov (!%p287_p5, %s1268_s9), 7 }
  0x17   : > { %530 = vmatprep.subr.bf16.mxu1 %v1417_v19  ;;  %v854_v50 = vld [vmem:[%s1764_s3 + $0x8] sm:$0xff]  ;;  %v1642_v51 = vld [vmem:[%s1764_s3] sm:$0xff]  ;;  %s1343_s10 = sshll.u32 %s1774_s9, 4 }
  0x18   : > { %v786_v5 = vld [vmem:[%s1765_s4] ss:$4 sm:$0x3]  ;;  %s1736_s18 = scalar_lea.vmem %s1766_s5, %s1343_s10 }
  0x19   : > { %628 = vmatpush1.bf16.msra.mxu0 %v1402_v7  ;;  %v791_v13 = vrot.slane %v786_v5, %v1648_v4 }
  0x1a   : > { %629 = vmatprep.subr.bf16.mxu0 %v1410_v12  ;;  %531 = vmatpush1.bf16.msra.mxu1 %v1419_v21 }
  0x1b   : > { %532 = vmatprep.subr.bf16.mxu1 %v1420_v22 }
  0x1c   : > { %1358 = vmatmul.mubr.msk.bf16.gmra.mxu0 %vm348_vm0, %v1396_v8  ;;  %v1654_v8 = vsub.s32 1, %v1645_v0 }
  0x1d   : > { %1361 = vmatprep.mubr.msk.bf16.mxu0 %vm348_vm0, %v1397_v9  ;;  %630 = vmatpush1.bf16.msra.mxu0 %v1408_v14 }
  0x1e   : > { %631 = vmatprep.subr.bf16.mxu0 %v1416_v16  ;;  %533 = vmatpush1.bf16.msra.mxu1 %v1422_v23 }
  0x1f   : > { %733 = vmatprep.subr.bf16.mxu1 %v1425_v24 }
  0x21   : > { %632 = vmatpush1.bf16.msra.mxu0 %v1414_v18  ;;  %v795_v18 = vrot.slane %v786_v5, %v1654_v8 }
  0x22   : > { %885 = vmatprep.subr.mxu0 %v854_v50 }
  0x24   : > { %1362 = vmatmul.mubr.msk.bf16.gmra.mxu0 %vm348_vm0, %v1398_v10 }
  0x25   : > { %649 = vmatprep.mubr.bf16.mxu0 %v1477_v20 }
  0xd4   : > { %v1355_v25 = vpop.f32.mrf.mxu0 }
  0xd6   : > { %v401_v26 = vpop.f32.mrf.mxu0 }
  0xd8   : > { %v1356_v27 = vpop.f32.mrf.mxu0 }
  0xd9   : > { %v449_v35 = vpack.c.bf16 %v1356_v27, %v1355_v25 }
  0xda   : > { %v404_v28 = vpop.f32.mrf.mxu0 }
  0xdb   : > { %v448_v29 = vpack.c.bf16 %v404_v28, %v401_v26 }
  0xdc   : > { %v1359_v30 = vpop.f32.mrf.mxu0 }
  0xdd   : > { %1310 = vmatmul.mubr.msk.bf16.vlgmr.msra.gmra.mxu0 %vm511_vm1, %v448_v29 }
  0xde   : > { %v417_v31 = vpop.f32.mrf.mxu0  ;;  %659 = vmatprep.mubr.bf16.mxu0 %v1477_v20  ;;  %886 = vmatpush1.xpose.msra.mxu0 %v1642_v51 }
  0xdf   : > { %969 = vmatprep.subr.mxu0 %v854_v50 }
  0xe0   : > { %v1360_v32 = vpop.f32.mrf.mxu0 }
  0xe1   : > { %v451_v43 = vpack.c.bf16 %v1360_v32, %v1359_v30 }
  0xe2   : > { %v420_v33 = vpop.f32.mrf.mxu0 }
  0xe3   : > { %v450_v36 = vpack.c.bf16 %v420_v33, %v417_v31 }
  0xe4   : > { %v1363_v38 = vpop.f32.mrf.mxu0 }
  0xe5   : > { %1300 = vmatmul.mubr.msk.bf16.vlgmr.msra.gmra.mxu1 %vm511_vm1, %v450_v36  ;;  %1311 = vmatmul.mubr.msk.bf16.gmra.mxu0 %vm511_vm1, %v449_v35 }
  0xe6   : > { %734 = vmatpush1.bf16.msra.mxu1 %v1423_v34  ;;  %560 = vmatprep.mubr.bf16.mxu1 %v1477_v20  ;;  %v433_v41 = vpop.f32.mrf.mxu0 }
  0xe7   : > { %735 = vmatprep.subr.bf16.mxu1 %v1428_v37 }
  0xe8   : > { %v1364_v45 = vpop.f32.mrf.mxu0 }
  0xe9   : > { %v453_v49 = vpack.c.bf16 %v1364_v45, %v1363_v38 }
  0xea   : > { %736 = vmatpush1.bf16.msra.mxu1 %v1426_v39  ;;  %v436_v47 = vpop.f32.mrf.mxu0 }
  0xeb   : > { %737 = vmatprep.subr.bf16.mxu1 %v1431_v40  ;;  %v452_v48 = vpack.c.bf16 %v436_v47, %v433_v41 }
  0xed   : > { %1301 = vmatmul.mubr.msk.bf16.gmra.mxu1 %vm511_vm1, %v451_v43 }
  0xee   : > { %738 = vmatpush1.bf16.msra.mxu1 %v1429_v42  ;;  %757 = vmatprep.mubr.bf16.mxu1 %v1477_v20 }
  0xef   : > { %739 = vmatprep.subr.bf16.mxu1 %v1434_v44 }
  0xf2   : > { %740 = vmatpush1.bf16.msra.mxu1 %v1432_v46 }
  0xf5   : > { %1328 = vmatmul.mubr.msk.bf16.vlgmr.msra.gmra.mxu1 %vm511_vm1, %v452_v48 }
  0xf6   : > { %767 = vmatprep.mubr.bf16.mxu1 %v1477_v20 }
  0xfd   : > { %1329 = vmatmul.mubr.msk.bf16.gmra.mxu1 %vm511_vm1, %v453_v49 }
 0x19d   : > { %v651_v52 = vpop.f32.mrf.mxu0 }
 0x19f   : > { %v653_v55 = vpop.f32.mrf.mxu0 }
 0x1a1   : > { %v655_v58 = vpop.f32.mrf.mxu0 }
 0x1a3   : > { %v657_v62 = vpop.f32.mrf.mxu0 }
 0x1a5   : > { %v552_v53 = vpop.f32.mrf.mxu1  ;;  %v661_v2 = vpop.f32.mrf.mxu0 }
 0x1a6   : > { %v652_v6 = vadd.f32 %v651_v52, %v552_v53 }
 0x1a7   : > { %v554_v54 = vpop.f32.mrf.mxu1  ;;  %v663_v11 = vpop.f32.mrf.mxu0 }
 0x1a8   : > { %v654_v10 = vadd.f32 %v653_v55, %v554_v54 }
 0x1a9   : > { %v556_v56 = vpop.f32.mrf.mxu1  ;;  %v665_v23 = vpop.f32.mrf.mxu0 }
 0x1aa   : > { %v656_v9 = vadd.f32 %v655_v58, %v556_v56 }
 0x1ab   : > { %v558_v57 = vpop.f32.mrf.mxu1  ;;  %v667_v34 = vpop.f32.mrf.mxu0 }
 0x1ac   : > { %v658_v15 = vadd.f32 %v657_v62, %v558_v57 }
 0x1ad   : > { %v562_v59 = vpop.f32.mrf.mxu1 }
 0x1ae   : > { %v662_v20 = vadd.f32 %v661_v2, %v562_v59 }
 0x1af   : > { %v564_v61 = vpop.f32.mrf.mxu1 }
 0x1b0   : > { %v664_v28 = vadd.f32 %v663_v11, %v564_v61 }
 0x1b1   : > { %v566_v63 = vpop.f32.mrf.mxu1 }
 0x1b2   : > { %v666_v32 = vadd.f32 %v665_v23, %v566_v63 }
 0x1b3   : > { %v568_v1 = vpop.f32.mrf.mxu1 }
 0x1b4   : > { %v668_v39 = vadd.f32 %v667_v34, %v568_v1  ;;  %v1478_v34 = vmov 0.0  }
 0x1b5   : > { %v759_v3 = vpop.f32.mrf.mxu1 }
 0x1b6   : > { %v778_v12 = vadd.f32 %v759_v3, %v652_v6 }
 0x1b7   : > { %v761_v7 = vpop.f32.mrf.mxu1 }
 0x1b8   : > { %v779_v17 = vadd.f32 %v761_v7, %v654_v10  ;;  %v1660_v24 = vadd.f32 %v791_v13, %v778_v12 }
 0x1b9   : > { %v763_v14 = vpop.f32.mrf.mxu1 }
 0x1ba   : > { %v780_v16 = vadd.f32 %v763_v14, %v656_v9  ;;  %v1664_v29 = vadd.f32 %v795_v18, %v779_v17  ;;  %v824_v35 = vmul.f32 %v1660_v24, %v1660_v24 }
 0x1bb   : > { %v765_v19 = vpop.f32.mrf.mxu1 }
 0x1bc   : > { %v1658_v21 = vadd.f32 %v791_v13, %v780_v16  ;;  %v781_v22 = vadd.f32 %v765_v19, %v658_v15  ;;  %v825_v43 = vmul.f32 %v1664_v29, %v1664_v29 }
 0x1bd   : > { %v769_v25 = vpop.f32.mrf.mxu1 }
 0x1be   : > { %v1662_v26 = vadd.f32 %v795_v18, %v781_v22  ;;  %v782_v27 = vadd.f32 %v769_v25, %v662_v20  ;;  %v826_v30 = vmul.f32 %v1658_v21, %v1658_v21  ;;  %v806_v40 = vadd.f32 %v1658_v21, %v1660_v24 }
 0x1bf   : > { %v771_v31 = vpop.f32.mrf.mxu1 }
 0x1c0   : > { %v1668_v33 = vadd.f32 %v791_v13, %v782_v27  ;;  %v827_v36 = vmul.f32 %v1662_v26, %v1662_v26  ;;  %v783_v37 = vadd.f32 %v771_v31, %v664_v28  ;;  %v832_v44 = vadd.f32 %v826_v30, %v824_v35 }
 0x1c1   : > { %v773_v38 = vpop.f32.mrf.mxu1  ;;  %v815_v47 = vadd.f32 %v1662_v26, %v1664_v29 }
 0x1c2   : > { %v828_v41 = vmul.f32 %v1668_v33, %v1668_v33  ;;  %v784_v42 = vadd.f32 %v773_v38, %v666_v32  ;;  %v1680_v45 = vadd.f32 %v795_v18, %v783_v37  ;;  %v807_v48 = vadd.f32 %v806_v40, %v1668_v33 }
 0x1c3   : > { %v775_v46 = vpop.f32.mrf.mxu1  ;;  %v841_v52 = vadd.f32 %v827_v36, %v825_v43 }
 0x1c4   : > { %v1685_v49 = vadd.f32 %v791_v13, %v784_v42  ;;  %v785_v50 = vadd.f32 %v775_v46, %v668_v39  ;;  %v833_v53 = vadd.f32 %v832_v44, %v828_v41  ;;  %v829_v54 = vmul.f32 %v1680_v45, %v1680_v45 }
 0x1c5   : > { %v816_v55 = vadd.f32 %v815_v47, %v1680_v45 }
 0x1c6   : > { %v808_v56 = vadd.f32 %v807_v48, %v1685_v49  ;;  %v830_v57 = vmul.f32 %v1685_v49, %v1685_v49  ;;  %v1693_v58 = vadd.f32 %v795_v18, %v785_v50  ;;  %v842_v59 = vadd.f32 %v841_v52, %v829_v54 }
 0x1c7   : > { %v1479_v50 = vmov 1966171168  }
 0x1c8   : > { %v809_v60 = vrot.slane %v808_v56, 4  ;;  %v834_v61 = vadd.f32 %v833_v53, %v830_v57  ;;  %v817_v62 = vadd.f32 %v816_v55, %v1693_v58  ;;  %v831_v63 = vmul.f32 %v1693_v58, %v1693_v58 }
 0x1c9   : > { %v1039_v52 = vunpack.c.l.s4 %v1479_v50 }
 0x1ca   : > { %v810_v1 = vadd.f32 %v809_v60, %v808_v56  ;;  %v835_v2 = vrot.slane %v834_v61, 4  ;;  %v818_v3 = vrot.slane %v817_v62, 4  ;;  %v843_v5 = vadd.f32 %v842_v59, %v831_v63 }
 0x1cb   : > { %v1040_v57 = vunpack.c.0.s8 %v1039_v52 }
 0x1cc   : > { %v811_v6 = vrot.slane %v810_v1, 2  ;;  %v836_v7 = vadd.f32 %v835_v2, %v834_v61  ;;  %v819_v9 = vadd.f32 %v818_v3, %v817_v62  ;;  %v844_v10 = vrot.slane %v843_v5, 4  ;;  %v1332_v3 = vld [vmem:[%s1765_s4 + $0x2] ss:$4 sm:$0x3] }
 0x1cd   : > { %v1043_v62 = vsub.s32 %v1040_v57, %v1645_v0 }
 0x1ce   : > { %v837_v11 = vrot.slane %v836_v7, 2  ;;  %v820_v12 = vrot.slane %v819_v9, 2  ;;  %v845_v13 = vadd.f32 %v844_v10, %v843_v5  ;;  %v812_v14 = vadd.f32 %v811_v6, %v810_v1 }
 0x1d0   : > { %v821_v15 = vadd.f32 %v820_v12, %v819_v9  ;;  %v846_v16 = vrot.slane %v845_v13, 2  ;;  %v838_v17 = vadd.f32 %v837_v11, %v836_v7  ;;  %v813_v22 = vrot.slane %v812_v14, 1 }
 0x1d2   : > { %v822_v18 = vrot.slane %v821_v15, 1  ;;  %v847_v19 = vadd.f32 %v846_v16, %v845_v13  ;;  %v839_v20 = vrot.slane %v838_v17, 1  ;;  %v814_v30 = vadd.f32 %v813_v22, %v812_v14 }
 0x1d4   : > { %v848_v23 = vrot.slane %v847_v19, 1  ;;  %v840_v25 = vadd.f32 %v839_v20, %v838_v17  ;;  %v823_v27 = vadd.f32 %v822_v18, %v821_v15 }
 0x1d6   : > { %v849_v28 = vadd.f32 %v848_v23, %v847_v19  ;;  %v851_v32 = vsel %vm850_vm2, %v814_v30, %v840_v25 }
 0x1d8   : > { %v852_v31 = vsel %vm850_vm2, %v823_v27, %v849_v28 }
 0x1d9   : > { %919 = vmatprep.mubr.f32.mxu0 %v852_v31 }
 0x1da   : > { %920 = vmatmul.mubr.f32.vlgmr.msra.gmra.mxu0 %v851_v32 }
 0x1db   : > { %970 = vmatpush1.msra.mxu0 %v1642_v51  ;;  %1003 = vmatprep.mubr.f32.mxu0 %v1478_v34  ;;  %v1331_v51 = vld [vmem:[%s1765_s4 + $0x1] ss:$4 sm:$0x3] }
 0x1dc   : > { %v1016_v46 = vrot.slane %v1331_v51, %v1648_v4  ;;  %v1020_v47 = vrot.slane %v1331_v51, %v1654_v8 }
 0x29a   : > { %v921_v35 = vpop.f32.mrf.mxu0 }
 0x29b   : > { %v925_v36 = vmul.f32 0.0009765625, %v921_v35 }
 0x29c   : > { %v923_v37 = vpop.f32.mrf.mxu0 }
 0x29d   : > { %v926_v38 = vmul.f32 %v925_v36, %v925_v36 }
 0x29f   : > { %v928_v39 = vrot.slane %v926_v38, 7 }
 0x2a1   : > { %v930_v40 = vsub.f32 %v925_v36, %v928_v39 }
 0x2a3   : > { %v931_v41 = vmax.f32 %v930_v40, 0.0 }
 0x2a5   : > { %v932_v42 = vadd.f32 1e-05, %v931_v41 }
 0x2a7   : > { %1435 = vrsqrt.f32 %v932_v42 }
 0x2b4   : > { %v1436_v43 = vpop.eup %1435 }
 0x2b5   : > { %v934_v44 = vsel %vm850_vm2, %v925_v36, %v1436_v43 }
 0x2b6   : > { %1330 = vmatmul.mubr.msk.f32.vlgmr.msra.gmra.mxu0 %vm935_vm3, %v934_v44 }
 0x376   : > { %v1005_v48 = vpop.f32.mrf.mxu0 }
 0x377   : > { %v1023_v53 = vmul.f32 %v1016_v46, %v1005_v48 }
 0x378   : > { %v1007_v54 = vpop.f32.mrf.mxu0 }
 0x379   : > { %v1024_v55 = vmul.f32 %v1020_v47, %v1007_v54  ;;  %v1029_v56 = vrot.slane %v1023_v53, 1  ;;  %v1057_v2 = vrot.slane %v1023_v53, %v1654_v8 }
 0x37b   : > { %v1030_v59 = vrot.slane %v1024_v55, 1  ;;  %v1033_v60 = vmul.f32 %v1029_v56, %v1005_v48  ;;  %v1061_v6 = vrot.slane %v1024_v55, %v1654_v8  ;;  %v1062_v9 = vmul.f32 %v1057_v2, %v1660_v24 }
 0x37c   : > { %v1064_v10 = vmul.f32 %v1057_v2, %v1658_v21  ;;  %v1066_v14 = vmul.f32 %v1057_v2, %v1668_v33  ;;  %v1068_v15 = vmul.f32 %v1057_v2, %v1685_v49 }
 0x37d   : > { %v1034_v61 = vmul.f32 %v1030_v59, %v1007_v54  ;;  %v1063_v11 = vmul.f32 %v1061_v6, %v1664_v29  ;;  %v1065_v0 = vmul.f32 %v1061_v6, %v1662_v26  ;;  %v1067_v16 = vmul.f32 %v1061_v6, %v1680_v45 }
 0x37e   : > { %v1069_v21 = vmul.f32 %v1061_v6, %v1693_v58 }
 0x37f   : > { %v1037_v63 = vcombine.low %v1033_v60, %v1034_v61 }
 0x381   : > { %v1044_v1 = vrot.slane %v1037_v63, %v1043_v62 }
 0x383   : > { %v1051_v5 = vrot.slane %v1044_v1, %v1043_v62 }
 0x385   : > { %v1053_v7 = vsub.f32 %v1332_v3, %v1051_v5 }
 0x387   : > { %v1074_v12 = vrot.slane %v1053_v7, %v1648_v4  ;;  %v1078_v13 = vrot.slane %v1053_v7, %v1654_v8 }
 0x389   : > { %v1081_v17 = vadd.f32 %v1074_v12, %v1062_v9  ;;  %v1082_v18 = vadd.f32 %v1078_v13, %v1063_v11  ;;  %v1083_v19 = vadd.f32 %v1074_v12, %v1064_v10  ;;  %v1084_v24 = vadd.f32 %v1078_v13, %v1065_v0 }
 0x38a   : > { %v1085_v20 = vadd.f32 %v1074_v12, %v1066_v14  ;;  %v1723_v29 = vadd.f32 %v1078_v13, %v1067_v16  ;;  %v1725_v26 = vadd.f32 %v1074_v12, %v1068_v15  ;;  %v1727_v4 = vadd.f32 %v1078_v13, %v1069_v21 }
 0x38b   : > { %v1097_v8 = vmin.f32 %v1081_v17, 0.0  ;;  %v1098_v33 = vmin.f32 %v1082_v18, 0.0  ;;  %v1099_v22 = vmin.f32 %v1083_v19, 0.0  ;;  %v1100_v49 = vmin.f32 %v1084_v24, 0.0 }
 0x38c   : > { %v1101_v23 = vmin.f32 %v1085_v20, 0.0  ;;  %v1102_v45 = vmin.f32 %v1723_v29, 0.0  ;;  %v1103_v25 = vmin.f32 %v1725_v26, 0.0  ;;  %v1104_v30 = vmin.f32 %v1727_v4, 0.0 }
 0x38d   : > { %v1105_v27 = vmul.f32 1.442695, %v1097_v8  ;;  %v1107_v28 = vmul.f32 1.442695, %v1098_v33  ;;  %v1109_v58 = vmul.f32 1.442695, %v1099_v22 }
 0x38e   : > { %v1111_v31 = vmul.f32 1.442695, %v1100_v49  ;;  %v1113_v32 = vmul.f32 1.442695, %v1101_v23  ;;  %v1115_v34 = vmul.f32 1.442695, %v1102_v45 }
 0x38f   : > { %1437 = vpow2.f32 %v1105_v27  ;;  %v1117_v35 = vmul.f32 1.442695, %v1103_v25  ;;  %v1119_v36 = vmul.f32 1.442695, %v1104_v30  ;;  %vm1089_vm4 = vcmp.gt.f32.partialorder %v1081_v17, 0.0 }
 0x390   : > { %1439 = vpow2.f32 %v1107_v28  ;;  %vm1090_vm5 = vcmp.gt.f32.partialorder %v1082_v18, 0.0  ;;  %vm1091_vm6 = vcmp.gt.f32.partialorder %v1083_v19, 0.0  ;;  %vm1092_vm7 = vcmp.gt.f32.partialorder %v1084_v24, 0.0 }
 0x391   : > { %1441 = vpow2.f32 %v1109_v58  ;;  %vm1093_vm8 = vcmp.gt.f32.partialorder %v1085_v20, 0.0  ;;  %vm1094_vm9 = vcmp.gt.f32.partialorder %v1723_v29, 0.0  ;;  %vm1095_vm10 = vcmp.gt.f32.partialorder %v1725_v26, 0.0 }
 0x392   : > { %1443 = vpow2.f32 %v1111_v31  ;;  %vm1096_vm11 = vcmp.gt.f32.partialorder %v1727_v4, 0.0 }
 0x393   : > { %1445 = vpow2.f32 %v1113_v32 }
 0x394   : > { %1447 = vpow2.f32 %v1115_v34 }
 0x395   : > { %1449 = vpow2.f32 %v1117_v35 }
 0x396   : > { %1451 = vpow2.f32 %v1119_v36 }
 0x39c   : > { %v1438_v37 = vpop.eup %1437 }
 0x39d   : > { %v1440_v38 = vpop.eup %1439  ;;  %v1333_v39 = vadd.f32 -1.0, %v1438_v37 }
 0x39e   : > { %v1442_v40 = vpop.eup %1441  ;;  %v1334_v41 = vadd.f32 -1.0, %v1440_v38 }
 0x39f   : > { %v1444_v42 = vpop.eup %1443  ;;  %v1335_v43 = vadd.f32 -1.0, %v1442_v40  ;;  %v1129_v44 = vsel %vm1089_vm4, %v1081_v17, %v1333_v39 }
 0x3a0   : > { %v1446_v51 = vpop.eup %1445  ;;  %v1336_v46 = vadd.f32 -1.0, %v1444_v42  ;;  %v1130_v47 = vsel %vm1090_vm5, %v1082_v18, %v1334_v41  ;;  %1137 = vst [vmem:[%s1736_s18] sm:$0xff] %v1129_v44 }
 0x3a1   : > { %v1448_v48 = vpop.eup %1447  ;;  %v1337_v50 = vadd.f32 -1.0, %v1446_v51  ;;  %v1131_v52 = vsel %vm1091_vm6, %v1083_v19, %v1335_v43  ;;  %1138 = vst [vmem:[%s1736_s18 + $0x8] sm:$0xff] %v1130_v47 }
 0x3a2   : > { %v1450_v53 = vpop.eup %1449  ;;  %v1338_v54 = vadd.f32 -1.0, %v1448_v48  ;;  %v1132_v55 = vsel %vm1092_vm7, %v1084_v24, %v1336_v46  ;;  %1139 = vst [vmem:[%s1736_s18 + $0x10] sm:$0xff] %v1131_v52 }
 0x3a3   : > { %v1452_v56 = vpop.eup %1451  ;;  %v1339_v57 = vadd.f32 -1.0, %v1450_v53  ;;  %v1133_v59 = vsel %vm1093_vm8, %v1085_v20, %v1337_v50  ;;  %1140 = vst [vmem:[%s1736_s18 + $0x18] sm:$0xff] %v1132_v55 }
 0x3a4   : > { %v1340_v60 = vadd.f32 -1.0, %v1452_v56  ;;  %v1134_v61 = vsel %vm1094_vm9, %v1723_v29, %v1338_v54  ;;  %1141 = vst [vmem:[%s1736_s18 + $0x20] sm:$0xff] %v1133_v59 }
 0x3a5   : > { %v1135_v62 = vsel %vm1095_vm10, %v1725_v26, %v1339_v57  ;;  %1142 = vst [vmem:[%s1736_s18 + $0x28] sm:$0xff] %v1134_v61 }
 0x3a6   : > { %v1136_v63 = vsel %vm1096_vm11, %v1727_v4, %v1340_v60  ;;  %1143 = vst [vmem:[%s1736_s18 + $0x30] sm:$0xff] %v1135_v62 }
 0x3a7   : > { %1144 = vst [vmem:[%s1736_s18 + $0x38] sm:$0xff] %v1136_v63 }
 0x3a8 PF: > { %s15_s20 = sadd.s32 1, %s1475_s20   ;;  %s1767_s18 = smov %s1471_s19 }
 0x3a9   : > { %p12_p6 = scmp.ge.s32.totalorder %s15_s20, 4   ;;  %s1768_s19 = smov %s1770_s21 }
 0x3ab   :  { %14 = sbr.rel (!%p12_p6) target bundleno = 2 (0x2), region = 80 }

</bundles_post_ra>
